<compile_context>
chip_gen: v7x
topology: tpu7x:2x2x1
jax: 0.10.0
libtpu: 0.0.40
codegen_flags: <defaults>
</compile_context>

<pallas_src>
import jax
import jax.numpy as jnp
from jax.experimental import pallas as pl
from jax.experimental.pallas import tpu as pltpu

_LANES = 128      # vreg lane width (last dim)
_SUBLANES = 8     # f32 sublanes (second-to-last dim)


def _round_up(x, m):
    return (x + m - 1) // m * m


# ----------------------------- kernels --------------------------------------
def _mlp_folded_kernel(x_ref, w_ref, b_ref, out_ref):
    # Single MXU pass: y = x @ (W1 @ W2) + (b1 @ W2 + b2), f32 accumulation.
    y = jnp.dot(x_ref[...], w_ref[...], preferred_element_type=jnp.float32)
    out_ref[...] = (y + b_ref[...]).astype(out_ref.dtype)


def _mlp_twolayer_kernel(x_ref, w1_ref, b1_ref, w2_ref, b2_ref, out_ref):
    # Exact sequential math (strict .float() -> Linear -> Linear): both
    # matmuls fused so the intermediate activation never leaves VMEM.
    h = jnp.dot(x_ref[...], w1_ref[...], preferred_element_type=jnp.float32) + b1_ref[...]
    y = jnp.dot(h, w2_ref[...], preferred_element_type=jnp.float32) + b2_ref[...]
    out_ref[...] = y.astype(out_ref.dtype)


# --------------------------- one-time weight prep ----------------------------
def prepare_mlp_params(w1, b1, w2, b2, *, fold=True):
    """One-time prep (hoisted out of the per-forward path).

    w1 : (nin, nout)   transposed relative to PyTorch's (out, in)
    b1 : (nout,)
    w2 : (nout, nout)
    b2 : (nout,)
    """
    nin, nout = w1.shape
    nout_p = _round_up(nout, _LANES)          # lane-dense output tiles
    pad_n = nout_p - nout
    w1 = jnp.asarray(w1, jnp.float32)
    w2 = jnp.asarray(w2, jnp.float32)
    b1 = jnp.asarray(b1, jnp.float32).reshape(1, nout)
    b2 = jnp.asarray(b2, jnp.float32).reshape(1, nout)
    if fold:
        # No nonlinearity between the Linears -> fold once here, not per call.
        w = jnp.pad(w1 @ w2, ((0, 0), (0, pad_n)))
        b = jnp.pad(b1 @ w2 + b2, ((0, 0), (0, pad_n)))
        return dict(folded=True, nin=nin, nout=nout, nout_p=nout_p, w=w, b=b)
    return dict(
        folded=False, nin=nin, nout=nout, nout_p=nout_p,
        w1=jnp.pad(w1, ((0, 0), (0, pad_n))),
        b1=jnp.pad(b1, ((0, 0), (0, pad_n))),
        w2=jnp.pad(w2, ((0, pad_n), (0, pad_n))),
        b2=jnp.pad(b2, ((0, 0), (0, pad_n))),
    )


def _vmem_capacity_bytes():
    try:
        return int(pltpu.get_tpu_info().vmem_capacity_bytes)
    except Exception:
        return 64 << 20   # conservative fallback = v7x per-TC VMEM


# ------------------------------- forward -------------------------------------
def mlp_forward(x, params, *, tile_b=1024):
    """y = Linear2(Linear1(x.float())) using params from prepare_mlp_params."""
    B, nin = x.shape
    assert nin == params["nin"]
    nout, nout_p = params["nout"], params["nout_p"]

    # PyTorch's input.float(): everything becomes f32 (no-op if already f32).
    x = x.astype(jnp.float32)

    # Batch tiling: large enough to amortize per-grid-step overhead, small
    # enough to give >= 4 grid steps (2 TCs on v7x + pipeline overlap).
    target_tiles = 4
    tile_b = max(_SUBLANES,
                 min(tile_b, _round_up(pl.cdiv(B, target_tiles), _SUBLANES)))
    num_tiles = pl.cdiv(B, tile_b)   # ragged last tile handled by Pallas masking

    # VMEM budget: invariant weight blocks counted at 2x (in case the pipeline
    # double-buffers them) + double-buffered x/out tiles + headroom.
    if params["folded"]:
        weight_bytes = (nin * nout_p + nout_p) * 4
    else:
        weight_bytes = (nin * nout_p + nout_p * nout_p + 2 * nout_p) * 4
    pipelined = 2 * tile_b * (nin + nout_p) * 4
    needed = 2 * weight_bytes + pipelined + (4 << 20)
    vmem_limit = int(min(max(needed, 32 << 20), int(0.9 * _vmem_capacity_bytes())))
    # NOTE: if the weights ever outgrow this budget, switch to a K/N-tiled grid
    # (256-multiple tiles on v6e/v7x) with a pl.when-initialized accumulator.

    x_spec = pl.BlockSpec((tile_b, nin), lambda i: (i, 0))        # pipelined over batch
    res = lambda i: (0, 0)                                        # VMEM-resident weights
    out_spec = pl.BlockSpec((tile_b, nout_p), lambda i: (i, 0))   # lane-dense stores

    if params["folded"]:
        kernel = _mlp_folded_kernel
        in_specs = [x_spec,
                    pl.BlockSpec((nin, nout_p), res),
                    pl.BlockSpec((1, nout_p), res)]
        args = (x, params["w"], params["b"])
    else:
        kernel = _mlp_twolayer_kernel
        in_specs = [x_spec,
                    pl.BlockSpec((nin, nout_p), res),
                    pl.BlockSpec((1, nout_p), res),
                    pl.BlockSpec((nout_p, nout_p), res),
                    pl.BlockSpec((1, nout_p), res)]
        args = (x, params["w1"], params["b1"], params["w2"], params["b2"])

    out_p = pl.pallas_call(
        kernel,
        out_shape=jax.ShapeDtypeStruct((B, nout_p), jnp.float32),
        grid_spec=pltpu.PrefetchScalarGridSpec(
            num_scalar_prefetch=0,
            grid=(num_tiles,),
            in_specs=in_specs,
            out_specs=out_spec,
        ),
        compiler_params=pltpu.CompilerParams(
            dimension_semantics=("parallel",),   # batch tiles shard across v7x's 2 TCs
            vmem_limit_bytes=vmem_limit,
        ),
    )(*args)

    # Only the one-time lane padding of nout is sliced off (no batch padding).
    return out_p if nout_p == nout else out_p[:, :nout]


# ------------------------------ test harness ---------------------------------
def init_mlp_params(key, nin, nout):
    # Mimic PyTorch nn.Linear default init: U(-1/sqrt(fan_in), 1/sqrt(fan_in)).
    k1, k2, k3, k4 = jax.random.split(key, 4)
    bound1 = 1.0 / jnp.sqrt(nin)
    bound2 = 1.0 / jnp.sqrt(nout)
    # stored transposed relative to PyTorch's (out, in): kernel sees (in, out)
    w1 = jax.random.uniform(k1, (nin, nout), jnp.float32, -bound1, bound1)
    b1 = jax.random.uniform(k2, (nout,), jnp.float32, -bound1, bound1)
    w2 = jax.random.uniform(k3, (nout, nout), jnp.float32, -bound2, bound2)
    b2 = jax.random.uniform(k4, (nout,), jnp.float32, -bound2, bound2)
    return w1, b1, w2, b2


def _ref(x, w1, b1, w2, b2):
    return (x.astype(jnp.float32) @ w1 + b1.reshape(1, -1)) @ w2 + b2.reshape(1, -1)


if __name__ == "__main__":
    key = jax.random.PRNGKey(0)
    k_x, k_p, k_x2 = jax.random.split(key, 3)

    # Small shapes matching the module's toy use.
    B, nin, nout = 8, 32, 64
    x = jax.random.normal(k_x, (B, nin), jnp.float32)
    w1, b1, w2, b2 = init_mlp_params(k_p, nin, nout)
    ref = _ref(x, w1, b1, w2, b2)

    # Folded path (single matmul; mathematically identical, few-ulp deviation).
    p_fold = prepare_mlp_params(w1, b1, w2, b2, fold=True)
    out = jax.block_until_ready(mlp_forward(x, p_fold))
    assert out.shape == (B, nout)
    assert jnp.allclose(out, ref, atol=1e-4, rtol=1e-4)

    # Exact two-matmul path (strict sequential .float() math).
    p_exact = prepare_mlp_params(w1, b1, w2, b2, fold=False)
    out_e = jax.block_until_ready(mlp_forward(x, p_exact))
    assert out_e.shape == (B, nout)
    assert jnp.allclose(out_e, ref, atol=1e-5, rtol=1e-5)

    # Multi-tile grid with a ragged batch (no padding; masked final block).
    B2 = 200
    x2 = jax.random.normal(k_x2, (B2, nin), jnp.float32)
    out2 = jax.block_until_ready(mlp_forward(x2, p_fold, tile_b=64))
    ref2 = _ref(x2, w1, b1, w2, b2)
    assert out2.shape == (B2, nout)
    assert jnp.allclose(out2, ref2, atol=1e-4, rtol=1e-4)

    print("KERNEL_OK")
</pallas_src>

<mosaic_0001>
module attributes {stable_mosaic.version = 11 : i64} {
  func.func @_mlp_folded_kernel(%arg0: i32, %arg1: memref<8x32xf32, #tpu.memory_space<vmem>>, %arg2: memref<32x128xf32, #tpu.memory_space<vmem>>, %arg3: memref<1x128xf32, #tpu.memory_space<vmem>>, %arg4: memref<8x128xf32, #tpu.memory_space<vmem>>) attributes {dimension_semantics = [#tpu.dimension_semantics<parallel>], iteration_bounds = array<i64: 1>, scalar_prefetch = 0 : i64, scratch_operands = 0 : i64, tpu.core_type = #tpu.core_type<tc>, window_params = [{transform_indices = @transform_0, window_bounds = array<i64: 8, 32>}, {pipeline_mode = #tpu.pipeline_mode<synchronous>, transform_indices = @transform_1, window_bounds = array<i64: 32, 128>}, {pipeline_mode = #tpu.pipeline_mode<synchronous>, transform_indices = @transform_2, window_bounds = array<i64: 1, 128>}, {transform_indices = @transform_3, window_bounds = array<i64: 8, 128>}]} {
    %c0 = arith.constant 0 : index
    %c0_0 = arith.constant 0 : index
    %0 = vector.load %arg1[%c0, %c0_0] : memref<8x32xf32, #tpu.memory_space<vmem>>, vector<8x32xf32>
    %c0_1 = arith.constant 0 : index
    %c0_2 = arith.constant 0 : index
    %1 = vector.load %arg2[%c0_1, %c0_2] : memref<32x128xf32, #tpu.memory_space<vmem>>, vector<32x128xf32>
    %cst = arith.constant dense<0.000000e+00> : vector<8x128xf32>
    %2 = tpu.matmul %0, %1, %cst {dimension_numbers = #tpu.dot_dimension_numbers<[1], [0], [0], [1], [0, 0, 1, 1], [], []>} : vector<8x32xf32>, vector<32x128xf32>, vector<8x128xf32> -> vector<8x128xf32>
    %c0_3 = arith.constant 0 : index
    %c0_4 = arith.constant 0 : index
    %3 = vector.load %arg3[%c0_3, %c0_4] : memref<1x128xf32, #tpu.memory_space<vmem>>, vector<1x128xf32>
    %4 = vector.broadcast %3 : vector<1x128xf32> to vector<8x128xf32>
    %5 = arith.addf %2, %4 : vector<8x128xf32>
    %c0_5 = arith.constant 0 : index
    %c0_6 = arith.constant 0 : index
    %6 = vector.load %arg4[%c0_5, %c0_6] : memref<8x128xf32, #tpu.memory_space<vmem>>, vector<8x128xf32>
    tpu.vector_store %arg4[%c0_5, %c0_6], %5 {strides = array<i32>} : memref<8x128xf32, #tpu.memory_space<vmem>>, vector<8x128xf32>,
    return
  }
  func.func @transform_0(%arg0: i32) -> (i32, i32) {
    %c0_i32 = arith.constant 0 : i32
    %c0_i32_0 = arith.constant 0 : i32
    return %arg0, %c0_i32 : i32, i32
  }
  func.func @transform_1(%arg0: i32) -> (i32, i32) {
    %c0_i32 = arith.constant 0 : i32
    %c0_i32_0 = arith.constant 0 : i32
    %c0_i32_1 = arith.constant 0 : i32
    return %c0_i32, %c0_i32_0 : i32, i32
  }
  func.func @transform_2(%arg0: i32) -> (i32, i32) {
    %c0_i32 = arith.constant 0 : i32
    %c0_i32_0 = arith.constant 0 : i32
    %c0_i32_1 = arith.constant 0 : i32
    return %c0_i32, %c0_i32_0 : i32, i32
  }
  func.func @transform_3(%arg0: i32) -> (i32, i32) {
    %c0_i32 = arith.constant 0 : i32
    %c0_i32_0 = arith.constant 0 : i32
    return %arg0, %c0_i32 : i32, i32
  }
}

</mosaic_0001>

<bundles_post_ra>
// kernel: tpu_custom_call.1
= control target key start
LH: loop header
LB: loop body
LE: loop exit
PB: predicated region body
PF: predicated region fallthrough
CT: control target
= control target key end

     0   :  { %8 = vsyncpa [#allocation3], 0  ;;  %s322_s0 = inlined_call_operand.hbm [shape: f32[8,32], index: 0, kind: input, shape index: {}]   ;;  %s323_s1 = inlined_call_operand.hbm [shape: f32[32,128], index: 1, kind: input, shape index: {}]   ;;  %s324_s2 = inlined_call_operand.vmem [shape: f32[1,128], index: 2, kind: input, shape index: {}]   ;;  %s325_s3 = inlined_call_operand.hbm [shape: f32[8,128], index: 3, kind: output, shape index: {}]  }
   0x1   :  { %9 = vsyncpa [#allocation6], 0 }
   0x2   :  { %10 = vsyncpa [#allocation4], 0  ;;  %s248_s12 = smov [#allocation2]   ;;  %s249_s14 = smov [#allocation5]  }
   0x3   :  { %s17_s13 = sshll.u32 %s248_s12, 4  ;;  %s26_s15 = sshll.u32 %s249_s14, 4  ;;  %s18_s13 = int_to_ptr.vmem [resolvable:$true] %s17_s13  ;;  %s276_s15 = int_to_ptr.vmem [resolvable:$true] %s26_s15 }
   0x4   :  { %s176_s18 = scalar_lea.hbm %s322_s0, 128 }
   0x5   :  { %p177_p0 = scmp.ne.s32.totalorder %s322_s0, %s176_s18  ;;  %p180_p1 = scmp.lt.u32.totalorder %s176_s18, %s322_s0 }
   0x7   :  { %p182_p2 = pnand %p180_p1, %p177_p0 }
   0x9   :  { %185 = shalt.err (!%p182_p2)
}
   0xa   :  { %s186_s23 = scalar_lea.vmem %s18_s13, 128  ;;  %p191_p4 = scmp.lt.s32.totalorder %s18_s13, %s18_s13 }
   0xb   :  { %p187_p3 = scmp.ne.s32.totalorder %s18_s13, %s186_s23  ;;  %p192_p5 = scmp.lt.s32.totalorder %s186_s23, %s186_s23 }
   0xd   :  { %p193_p6 = por %p192_p5, %p191_p4 }
   0xf   :  { %p194_p7 = pnand %p193_p6, %p187_p3 }
  0x11   :  { %197 = shalt.err (!%p194_p7)
}
  0x12   :  { %20 = dma.hbm_to_vmem [thread:$0]  %s322_s0, 128, %s18_s13, [#allocation3]  }
  0x13   :  { %s198_s28 = scalar_lea.hbm %s323_s1, 512 }
  0x14   :  { %p199_p8 = scmp.ne.s32.totalorder %s323_s1, %s198_s28  ;;  %p202_p9 = scmp.lt.u32.totalorder %s198_s28, %s323_s1 }
  0x16   :  { %p204_p10 = pnand %p202_p9, %p199_p8 }
  0x18   :  { %207 = shalt.err (!%p204_p10)
}
  0x19   :  { %s208_s6 = scalar_lea.vmem %s276_s15, 512  ;;  %p213_p12 = scmp.lt.s32.totalorder %s276_s15, %s276_s15 }
  0x1a   :  { %p209_p11 = scmp.ne.s32.totalorder %s276_s15, %s208_s6  ;;  %p214_p13 = scmp.lt.s32.totalorder %s208_s6, %s208_s6 }
  0x1c   :  { %p215_p0 = por %p214_p13, %p213_p12 }
  0x1e   :  { %p216_p1 = pnand %p215_p0, %p209_p11 }
  0x20   :  { %219 = shalt.err (!%p216_p1)
}
  0x21   :  { %s250_s0 = smov 128   ;;  %s251_s7 = smov 8  }
  0x22   :  { %32 = dma.hbm_to_vmem [thread:$0]  %s323_s1, 512, %s276_s15, [#allocation6], %s250_s0, %s250_s0, %s251_s7  }
  0x23   :  { %242 = dma.done.wait [#allocation3], 128  }
  0x24   :  { %243 = vsyncadd [#allocation3], 4294967168 }
  0x25   :  { %244 = dma.done.wait [#allocation6], 512  }
  0x26   :  { %245 = vsyncadd [#allocation6], 4294966784  ;;  %v252_v0 = vmov 0.0|0.0   ;;  %vm253_vm0 = vmmov 0   ;;  %v254_v1 = vmov 0.0   ;;  %v42_v2 = vld [vmem:[#allocation5] sm:$0xff] }
  0x27   :  { %162 = vmatprep.subr.bf16.mxu0 %v252_v0  ;;  %159 = vmatprep.mubr.msk.f32.mxu0 %vm253_vm0, %v254_v1  ;;  %v43_v3 = vld [vmem:[#allocation5 + $0x8] sm:$0xff]  ;;  %v44_v4 = vld [vmem:[#allocation5 + $0x10] sm:$0xff]  ;;  %v45_v6 = vld [vmem:[#allocation5 + $0x18] sm:$0xff]  ;;  %vm53_vm1 = vcmask 261120   ;;  %s255_s11 = smov [#allocation7]  }
  0x28   :  { %v163_v5 = vpack.c.bf16 %v43_v3, %v42_v2  ;;  %v166_v7 = vpack.c.bf16 %v45_v6, %v44_v4  ;;  %v41_v8 = vld [vmem:[#allocation2] sm:$0xff]  ;;  %s134_s12 = sshll.u32 %s255_s11, 4  ;;  %s135_s12 = int_to_ptr.vmem [resolvable:$true] %s134_s12 }
  0x29   :  { %v144_v9 = vld [vmem:[%s324_s2] ss:$0 sm:$0xff]  ;;  %s220_s13 = scalar_lea.vmem %s135_s12, 128  ;;  %p225_p3 = scmp.lt.s32.totalorder %s135_s12, %s135_s12 }
  0x2a   :  { %164 = vmatpush3.bf16.msra.mxu0 %v163_v5  ;;  %p221_p2 = scmp.ne.s32.totalorder %s135_s12, %s220_s13  ;;  %p226_p4 = scmp.lt.s32.totalorder %s220_s13, %s220_s13 }
  0x2b   :  { %165 = vmatprep.subr.bf16.mxu0 %v252_v0 }
  0x2c   :  { %p227_p5 = por %p226_p4, %p225_p3 }
  0x2e   :  { %167 = vmatpush3.bf16.msra.mxu0 %v166_v7  ;;  %p228_p6 = pnand %p227_p5, %p221_p2 }
  0x31   :  { %160 = vmatmul.mubr.msk.f32.vlgmr.msra.gmra.mrb[0].mxu0 %vm53_vm1, %v41_v8 }
 0x104   :  { %v123_v10 = vpop.f32.mrb[0].mxu0 }
 0x105   :  { %v124_v11 = vadd.f32 %v144_v9, %v123_v10  ;;  %v161_v12 = vpop.f32.mrb[1].mxu0 }
 0x107   :  { %127 = vst [vmem:[#allocation7] sm:$0xff] %v124_v11 }
 0x108   :  { %231 = shalt.err (!%p228_p6)
}
 0x109   :  { %s232_s16 = scalar_lea.hbm %s325_s3, 128 }
 0x10a   :  { %p233_p7 = scmp.ne.s32.totalorder %s325_s3, %s232_s16  ;;  %p236_p8 = scmp.lt.u32.totalorder %s232_s16, %s325_s3 }
 0x10c   :  { %p238_p9 = pnand %p236_p8, %p233_p7 }
 0x10e   :  { %241 = shalt.err (!%p238_p9)
}
 0x10f   :  { %137 = dma.vmem_to_hbm [thread:$0]  %s135_s12, 128, %s325_s3, [#allocation4]  }
 0x110   :  { %246 = dma.done.wait [#allocation4], 128  }
 0x111   :  { %247 = vsyncadd [#allocation4], 4294967168 }
 0x112   :  { %141 = vsyncpa [#allocation3], 1 }
 0x113   :  { %142 = vsyncpa [#allocation6], 1 }
 0x114   :  { %143 = vsyncpa [#allocation4], 1 }

</bundles_post_ra>
